<compile_context>
chip_gen: v5e
topology: v5e:2x2
jax: 0.10.0
libtpu: 0.0.40
codegen_flags: <defaults>
</compile_context>

<pallas_src>
import functools

import jax
import jax.numpy as jnp
from jax.experimental import pallas as pl
from jax.experimental.pallas import tpu as pltpu


def _gelu(x, approximate):
    if approximate:
        # tanh-approx GELU -> EUP slot (co-issues under MXU work)
        c = jnp.asarray(0.7978845608028654, x.dtype)   # sqrt(2/pi)
        return 0.5 * x * (1.0 + jnp.tanh(c * (x + 0.044715 * x * x * x)))
    # exact erf-based GELU (matches torch.nn.GELU() default)
    return 0.5 * x * (1.0 + jax.lax.erf(x * jnp.asarray(0.7071067811865476, x.dtype)))


def ffn_kernel(x_ref, w1_ref, b1_ref, w2_ref, b2_ref, o_ref, acc_ref, *, approximate):
    h_idx = pl.program_id(1)

    @pl.when(h_idx == 0)
    def _init():
        acc_ref[...] = jnp.zeros_like(acc_ref)

    # x is streamed in its HBM dtype; cast to the matmul dtype in VMEM so the
    # wrapper does not burn an extra HBM pass casting x.
    x_mm = x_ref[...].astype(w1_ref.dtype)
    # first matmul on the (D, th) weight chunk; f32 accumulation on the MXU
    h = jnp.dot(x_mm, w1_ref[...], preferred_element_type=jnp.float32)
    h = _gelu(h + b1_ref[...], approximate)            # bias + activation in f32
    # contract the activated hidden chunk straight into the (tm, D) accumulator
    # (bf16 cast of the intermediate is a deliberate accuracy/speed trade-off)
    acc_ref[...] += jnp.dot(h.astype(w2_ref.dtype), w2_ref[...],
                            preferred_element_type=jnp.float32)

    @pl.when(h_idx == pl.num_programs(1) - 1)
    def _finalize():
        y = acc_ref[...] + b2_ref[...]                  # b2 added once, at the end
        o_ref[...] = _gelu(y, approximate).astype(o_ref.dtype)


def _round_up(v, m):
    return (v + m - 1) // m * m


def _vmem_capacity_bytes():
    """Physical VMEM per core (128 MiB on v5e/v6e, 64 MiB on v7x)."""
    try:
        cap = getattr(pltpu.get_tpu_info(), "vmem_capacity_bytes", None)
        if cap:
            return int(cap), True
    except Exception:
        pass
    return 64 * 2**20, False   # conservative fallback, valid on every generation


def _largest_aligned_divisor(n, limit, align=128):
    """Largest multiple of `align` that divides n and is <= limit (or None)."""
    best = None
    d = align
    while d <= min(limit, n):
        if n % d == 0:
            best = d
        d += align
    return best


def _choose_tm(M, target, min_row_tiles):
    """Row tile: balance tiles, prefer MXU-aligned sizes, avoid large padding."""
    n_tiles = max(min_row_tiles, -(-M // max(target, 8)))
    tm = -(-M // n_tiles)
    for align in (256, 128, 8):
        cand = _round_up(tm, align)
        pad = _round_up(M, cand) - M
        if pad <= max(M // 8, 8):
            return cand
    return _round_up(tm, 8)


def _vmem_bytes(tm, th, D, x_bytes, w_bytes, out_bytes):
    return (2 * tm * D * x_bytes            # x block (double buffered)
            + 2 * D * th * w_bytes          # w1 block
            + 2 * th * D * w_bytes          # w2 block
            + 2 * (th + D) * 4              # bias blocks
            + 2 * tm * D * out_bytes        # output block
            + tm * D * 4                    # f32 accumulator scratch
            + tm * th * (4 + w_bytes)       # (tm, th) intermediate + bf16 copy
            + tm * D * w_bytes)             # in-kernel x cast


def feed_forward(x, w1, b1, w2, b2, *, tm=None, th=None, use_bf16=True,
                 approximate_gelu=False):
    """Fused FFN: gelu(gelu(x @ w1 + b1) @ w2 + b2), tiled over rows and hidden."""
    B, S, D = x.shape
    H = w1.shape[1]
    M = B * S
    out_dtype = x.dtype
    mm_dtype = jnp.bfloat16 if use_bf16 else x.dtype

    x_bytes = jnp.dtype(x.dtype).itemsize
    w_bytes = jnp.dtype(mm_dtype).itemsize
    out_bytes = jnp.dtype(out_dtype).itemsize

    vmem_cap, cap_known = _vmem_capacity_bytes()
    small_vmem = cap_known and vmem_cap <= 64 * 2**20    # v7x-like: 64 MiB, 2 TCs
    tile_budget = int(0.75 * vmem_cap)

    # --- hidden tile: keep full weights resident in VMEM when they fit;
    #     else largest 128-multiple divisor of H <= generation target. ---
    if th is None:
        if 4 * D * H * w_bytes <= int(0.45 * vmem_cap):   # 2 matrices x 2 buffers
            th = H
        else:
            th = _largest_aligned_divisor(H, 256 if small_vmem else 512) or H
    else:
        th = min(th, H)
        if th != H and (H % th != 0 or th % 128 != 0):
            th = _largest_aligned_divisor(H, th) or H
    # TODO(synk): pad/mask the hidden dim in-kernel when H has no 128-multiple
    # divisor instead of falling back to th = H.

    # --- row tile: large enough to amortize weight streaming (AI ~ tm flops/byte),
    #     MXU-aligned, and >= 2 tiles on dual-TensorCore chips when M allows. ---
    if tm is None:
        tm = 768 if small_vmem else 1024
    min_row_tiles = 2 if (small_vmem and M >= 512) else 1
    tm = _choose_tm(M, max(8, tm), min_row_tiles)

    # --- shrink tiles into the VMEM budget (row tile first, hidden tile second) ---
    while _vmem_bytes(tm, th, D, x_bytes, w_bytes, out_bytes) > tile_budget and tm > 256:
        tm = _round_up(max(256, tm - 256), 8)
    while _vmem_bytes(tm, th, D, x_bytes, w_bytes, out_bytes) > tile_budget and th > 128:
        smaller = _largest_aligned_divisor(H, th - 128)
        if smaller is None:
            break
        th = smaller

    Mp = _round_up(M, tm)
    n_row_tiles = Mp // tm
    n_h = H // th

    x2 = x.reshape(M, D)
    if Mp != M:
        # TODO(synk): mask/short-store the ragged last row tile in-kernel instead
        # of padding x and slicing the output (saves two HBM passes for ragged M).
        x2 = jnp.pad(x2, ((0, Mp - M), (0, 0)))

    # Weights should be pre-cast to bf16 once at parameter setup; casting here is
    # only a correctness fallback for f32 weights.
    w1c = w1 if w1.dtype == mm_dtype else w1.astype(mm_dtype)
    w2c = w2 if w2.dtype == mm_dtype else w2.astype(mm_dtype)
    b1r = b1.reshape(1, H).astype(jnp.float32)
    b2r = b2.reshape(1, D).astype(jnp.float32)

    vmem_needed = _vmem_bytes(tm, th, D, x_bytes, w_bytes, out_bytes)
    vmem_limit = int(min(int(0.9 * vmem_cap),
                         max(32 * 2**20, int(1.3 * vmem_needed))))

    cost = pl.CostEstimate(
        flops=4 * Mp * D * H,                     # two matmuls, 2 flops/MAC
        transcendentals=Mp * (H + D),             # two GELU activations
        bytes_accessed=(Mp * D * x_bytes
                        + (n_row_tiles if n_h > 1 else 1) * 2 * D * H * w_bytes
                        + n_row_tiles * (H + D) * 4
                        + Mp * D * out_bytes),
    )

    kernel = functools.partial(ffn_kernel, approximate=approximate_gelu)

    out = pl.pallas_call(
        kernel,
        out_shape=jax.ShapeDtypeStruct((Mp, D), out_dtype),
        grid_spec=pltpu.PrefetchScalarGridSpec(
            num_scalar_prefetch=0,
            grid=(n_row_tiles, n_h),                          # rows, hidden-reduction
            in_specs=[
                pl.BlockSpec((tm, D), lambda i, h: (i, 0)),   # x rows (resident over h)
                pl.BlockSpec((D, th), lambda i, h: (0, h)),   # w1 hidden chunk
                pl.BlockSpec((1, th), lambda i, h: (0, h)),   # b1 hidden chunk
                pl.BlockSpec((th, D), lambda i, h: (h, 0)),   # w2 hidden chunk
                pl.BlockSpec((1, D), lambda i, h: (0, 0)),    # b2 (constant)
            ],
            out_specs=pl.BlockSpec((tm, D), lambda i, h: (i, 0)),
            scratch_shapes=[pltpu.VMEM((tm, D), jnp.float32)],  # f32 accumulator
        ),
        compiler_params=pltpu.CompilerParams(
            dimension_semantics=("parallel", "arbitrary"),
            vmem_limit_bytes=vmem_limit,
        ),
        cost_estimate=cost,
    )(x2, w1c, b1r, w2c, b2r)

    return out[:M].reshape(B, S, D)


def init_params(key, dim):
    """Deterministic init matching PyTorch nn.Linear (U(-1/sqrt(fan_in), +))."""
    hidden = 4 * dim
    k1, k2, k3, k4 = jax.random.split(key, 4)
    lim1 = 1.0 / jnp.sqrt(dim)
    lim2 = 1.0 / jnp.sqrt(hidden)
    w1 = jax.random.uniform(k1, (dim, hidden), jnp.float32, -lim1, lim1)
    b1 = jax.random.uniform(k2, (hidden,), jnp.float32, -lim1, lim1)
    w2 = jax.random.uniform(k3, (hidden, dim), jnp.float32, -lim2, lim2)
    b2 = jax.random.uniform(k4, (dim,), jnp.float32, -lim2, lim2)
    return w1, b1, w2, b2


def feed_forward_ref(x, w1, b1, w2, b2):
    h = jax.nn.gelu(x @ w1 + b1, approximate=False)
    return jax.nn.gelu(h @ w2 + b2, approximate=False)


if __name__ == "__main__":
    key = jax.random.PRNGKey(0)
    kp, kx, kp2, kx2, kx3 = jax.random.split(key, 5)

    # 1) small exact-precision check (f32 matmuls, single grid step)
    dim, B, S = 32, 2, 8
    w1, b1, w2, b2 = init_params(kp, dim)
    x = jax.random.normal(kx, (B, S, dim), jnp.float32)
    out = jax.block_until_ready(feed_forward(x, w1, b1, w2, b2, use_bf16=False))
    ref = feed_forward_ref(x, w1, b1, w2, b2)
    assert out.shape == (B, S, dim)
    assert jnp.allclose(out, ref, atol=1e-5, rtol=1e-5), "f32 mismatch vs reference"

    # 2) tiled + padded + bf16 path: ragged M, multi-step hidden reduction
    dim2, B2, S2 = 128, 2, 200             # M=400 (ragged), H=512
    w1b, b1b, w2b, b2b = init_params(kp2, dim2)
    # pre-cast weights to bf16 once (parameter-setup-time cast, not per call)
    w1b16, w2b16 = w1b.astype(jnp.bfloat16), w2b.astype(jnp.bfloat16)
    x2 = jax.random.normal(kx2, (B2, S2, dim2), jnp.float32)
    out2 = jax.block_until_ready(
        feed_forward(x2, w1b16, b1b, w2b16, b2b, tm=128, th=128, use_bf16=True))
    ref2 = feed_forward_ref(x2, w1b, b1b, w2b, b2b)
    assert out2.shape == (B2, S2, dim2)
    assert jnp.allclose(out2, ref2, atol=2e-2, rtol=2e-2), "bf16 tiled mismatch"

    # 3) default auto-tiling path (resident weights, MXU-aligned row tiles)
    x3 = jax.random.normal(kx3, (2, 256, dim2), jnp.float32)
    out3 = jax.block_until_ready(feed_forward(x3, w1b16, b1b, w2b16, b2b))
    ref3 = feed_forward_ref(x3, w1b, b1b, w2b, b2b)
    assert out3.shape == (2, 256, dim2)
    assert jnp.allclose(out3, ref3, atol=2e-2, rtol=2e-2), "bf16 default mismatch"

    print("KERNEL_OK")
</pallas_src>

<mosaic_0001>
module attributes {stable_mosaic.version = 11 : i64} {
  func.func @ffn_kernel(%arg0: i32, %arg1: i32, %arg2: memref<16x32xf32, #tpu.memory_space<vmem>>, %arg3: memref<32x128xf32, #tpu.memory_space<vmem>>, %arg4: memref<1x128xf32, #tpu.memory_space<vmem>>, %arg5: memref<128x32xf32, #tpu.memory_space<vmem>>, %arg6: memref<1x32xf32, #tpu.memory_space<vmem>>, %arg7: memref<16x32xf32, #tpu.memory_space<vmem>>, %arg8: memref<16x32xf32, #tpu.memory_space<vmem>>) attributes {dimension_semantics = [#tpu.dimension_semantics<parallel>, #tpu.dimension_semantics<arbitrary>], iteration_bounds = array<i64: 1, 1>, scalar_prefetch = 0 : i64, scratch_operands = 1 : i64, tpu.core_type = #tpu.core_type<tc>, window_params = [{transform_indices = @transform_0, window_bounds = array<i64: 16, 32>}, {transform_indices = @transform_1, window_bounds = array<i64: 32, 128>}, {transform_indices = @transform_2, window_bounds = array<i64: 1, 128>}, {transform_indices = @transform_3, window_bounds = array<i64: 128, 32>}, {pipeline_mode = #tpu.pipeline_mode<synchronous>, transform_indices = @transform_4, window_bounds = array<i64: 1, 32>}, {transform_indices = @transform_5, window_bounds = array<i64: 16, 32>}]} {
    %c0_i32 = arith.constant 0 : i32
    %0 = arith.cmpi eq, %arg1, %c0_i32 : i32
    %1 = arith.extui %0 : i1 to i32
    %c0_i32_0 = arith.constant 0 : i32
    %2 = arith.cmpi ne, %1, %c0_i32_0 : i32
    scf.if %2 {
      %cst_18 = arith.constant 0.000000e+00 : f32
      %25 = vector.broadcast %cst_18 : f32 to vector<16x32xf32>
      %c0_19 = arith.constant 0 : index
      %c0_20 = arith.constant 0 : index
      %26 = vector.load %arg8[%c0_19, %c0_20] : memref<16x32xf32, #tpu.memory_space<vmem>>, vector<16x32xf32>
      tpu.vector_store %arg8[%c0_19, %c0_20], %25 {strides = array<i32>} : memref<16x32xf32, #tpu.memory_space<vmem>>, vector<16x32xf32>,
    } else {
    }
    %c0 = arith.constant 0 : index
    %c0_1 = arith.constant 0 : index
    %3 = vector.load %arg2[%c0, %c0_1] : memref<16x32xf32, #tpu.memory_space<vmem>>, vector<16x32xf32>
    %c0_2 = arith.constant 0 : index
    %c0_3 = arith.constant 0 : index
    %4 = vector.load %arg3[%c0_2, %c0_3] : memref<32x128xf32, #tpu.memory_space<vmem>>, vector<32x128xf32>
    %cst = arith.constant dense<0.000000e+00> : vector<16x128xf32>
    %5 = tpu.matmul %3, %4, %cst {dimension_numbers = #tpu.dot_dimension_numbers<[1], [0], [0], [1], [0, 0, 1, 1], [], []>} : vector<16x32xf32>, vector<32x128xf32>, vector<16x128xf32> -> vector<16x128xf32>
    %c0_4 = arith.constant 0 : index
    %c0_5 = arith.constant 0 : index
    %6 = vector.load %arg4[%c0_4, %c0_5] : memref<1x128xf32, #tpu.memory_space<vmem>>, vector<1x128xf32>
    %7 = vector.broadcast %6 : vector<1x128xf32> to vector<16x128xf32>
    %8 = arith.addf %5, %7 : vector<16x128xf32>
    %cst_6 = arith.constant 5.000000e-01 : f32
    %9 = vector.broadcast %cst_6 : f32 to vector<16x128xf32>
    %10 = arith.mulf %9, %8 : vector<16x128xf32>
    %cst_7 = arith.constant 0.707106769 : f32
    %11 = vector.broadcast %cst_7 : f32 to vector<16x128xf32>
    %12 = arith.mulf %8, %11 : vector<16x128xf32>
    %13 = math.erf %12 : vector<16x128xf32>
    %cst_8 = arith.constant 1.000000e+00 : f32
    %14 = vector.broadcast %cst_8 : f32 to vector<16x128xf32>
    %15 = arith.addf %14, %13 : vector<16x128xf32>
    %16 = arith.mulf %10, %15 : vector<16x128xf32>
    %c0_9 = arith.constant 0 : index
    %c0_10 = arith.constant 0 : index
    %17 = vector.load %arg8[%c0_9, %c0_10] : memref<16x32xf32, #tpu.memory_space<vmem>>, vector<16x32xf32>
    %c0_11 = arith.constant 0 : index
    %c0_12 = arith.constant 0 : index
    %18 = vector.load %arg5[%c0_11, %c0_12] : memref<128x32xf32, #tpu.memory_space<vmem>>, vector<128x32xf32>
    %cst_13 = arith.constant dense<0.000000e+00> : vector<16x32xf32>
    %19 = tpu.matmul %16, %18, %cst_13 {dimension_numbers = #tpu.dot_dimension_numbers<[1], [0], [0], [1], [0, 0, 1, 1], [], []>} : vector<16x128xf32>, vector<128x32xf32>, vector<16x32xf32> -> vector<16x32xf32>
    %20 = arith.addf %17, %19 : vector<16x32xf32>
    %c0_14 = arith.constant 0 : index
    %c0_15 = arith.constant 0 : index
    %21 = vector.load %arg8[%c0_14, %c0_15] : memref<16x32xf32, #tpu.memory_space<vmem>>, vector<16x32xf32>
    tpu.vector_store %arg8[%c0_14, %c0_15], %20 {strides = array<i32>} : memref<16x32xf32, #tpu.memory_space<vmem>>, vector<16x32xf32>,
    %c0_i32_16 = arith.constant 0 : i32
    %22 = arith.cmpi eq, %arg1, %c0_i32_16 : i32
    %23 = arith.extui %22 : i1 to i32
    %c0_i32_17 = arith.constant 0 : i32
    %24 = arith.cmpi ne, %23, %c0_i32_17 : i32
    scf.if %24 {
      %c0_18 = arith.constant 0 : index
      %c0_19 = arith.constant 0 : index
      %25 = vector.load %arg8[%c0_18, %c0_19] : memref<16x32xf32, #tpu.memory_space<vmem>>, vector<16x32xf32>
      %c0_20 = arith.constant 0 : index
      %c0_21 = arith.constant 0 : index
      %26 = vector.load %arg6[%c0_20, %c0_21] : memref<1x32xf32, #tpu.memory_space<vmem>>, vector<1x32xf32>
      %27 = vector.broadcast %26 : vector<1x32xf32> to vector<16x32xf32>
      %28 = arith.addf %25, %27 : vector<16x32xf32>
      %cst_22 = arith.constant 5.000000e-01 : f32
      %29 = vector.broadcast %cst_22 : f32 to vector<16x32xf32>
      %30 = arith.mulf %29, %28 : vector<16x32xf32>
      %cst_23 = arith.constant 0.707106769 : f32
      %31 = vector.broadcast %cst_23 : f32 to vector<16x32xf32>
      %32 = arith.mulf %28, %31 : vector<16x32xf32>
      %33 = math.erf %32 : vector<16x32xf32>
      %cst_24 = arith.constant 1.000000e+00 : f32
      %34 = vector.broadcast %cst_24 : f32 to vector<16x32xf32>
      %35 = arith.addf %34, %33 : vector<16x32xf32>
      %36 = arith.mulf %30, %35 : vector<16x32xf32>
      %c0_25 = arith.constant 0 : index
      %c0_26 = arith.constant 0 : index
      %37 = vector.load %arg7[%c0_25, %c0_26] : memref<16x32xf32, #tpu.memory_space<vmem>>, vector<16x32xf32>
      tpu.vector_store %arg7[%c0_25, %c0_26], %36 {strides = array<i32>} : memref<16x32xf32, #tpu.memory_space<vmem>>, vector<16x32xf32>,
    } else {
    }
    return
  }
  func.func @transform_0(%arg0: i32, %arg1: i32) -> (i32, i32) {
    %c0_i32 = arith.constant 0 : i32
    %c0_i32_0 = arith.constant 0 : i32
    return %arg0, %c0_i32 : i32, i32
  }
  func.func @transform_1(%arg0: i32, %arg1: i32) -> (i32, i32) {
    %c0_i32 = arith.constant 0 : i32
    %c0_i32_0 = arith.constant 0 : i32
    return %c0_i32, %arg1 : i32, i32
  }
  func.func @transform_2(%arg0: i32, %arg1: i32) -> (i32, i32) {
    %c0_i32 = arith.constant 0 : i32
    %c0_i32_0 = arith.constant 0 : i32
    return %c0_i32, %arg1 : i32, i32
  }
  func.func @transform_3(%arg0: i32, %arg1: i32) -> (i32, i32) {
    %c0_i32 = arith.constant 0 : i32
    %c0_i32_0 = arith.constant 0 : i32
    return %arg1, %c0_i32 : i32, i32
  }
  func.func @transform_4(%arg0: i32, %arg1: i32) -> (i32, i32) {
    %c0_i32 = arith.constant 0 : i32
    %c0_i32_0 = arith.constant 0 : i32
    %c0_i32_1 = arith.constant 0 : i32
    return %c0_i32, %c0_i32_0 : i32, i32
  }
  func.func @transform_5(%arg0: i32, %arg1: i32) -> (i32, i32) {
    %c0_i32 = arith.constant 0 : i32
    %c0_i32_0 = arith.constant 0 : i32
    return %arg0, %c0_i32 : i32, i32
  }
}

</mosaic_0001>

<bundles_post_ra>
// kernel: tpu_custom_call.1
= control target key start
LH: loop header
LB: loop body
LE: loop exit
PB: predicated region body
PF: predicated region fallthrough
CT: control target
= control target key end

     0   :  { %s542_s0 = inlined_call_operand.vmem [shape: f32[16,32], index: 0, kind: input, shape index: {}]   ;;  %s543_s1 = inlined_call_operand.vmem [shape: f32[32,128], index: 1, kind: input, shape index: {}]   ;;  %s544_s2 = inlined_call_operand.vmem [shape: f32[1,128], index: 2, kind: input, shape index: {}]   ;;  %s545_s3 = inlined_call_operand.vmem [shape: f32[128,32], index: 3, kind: input, shape index: {}]   ;;  %s546_s4 = inlined_call_operand.vmem [shape: f32[1,32], index: 4, kind: input, shape index: {}]   ;;  %s547_s5 = inlined_call_operand.hbm [shape: f32[16,32], index: 5, kind: output, shape index: {}]  }
   0x1   :  { %v33_v0 = vld [vmem:[%s543_s1 + $0x18] sm:$0xff]  ;;  %v32_v1 = vld [vmem:[%s543_s1 + $0x10] sm:$0xff]  ;;  %v31_v2 = vld [vmem:[%s543_s1 + $0x8] sm:$0xff] }
   0x2   :  { %57 = vmatpush.msra.mxu0 %v33_v0 }
   0x3   :  { %10 = vsyncpa [#allocation4], 0  ;;  %v30_v3 = vld [vmem:[%s543_s1] sm:$0xff]  ;;  %vm25_vm0 = vcmask 261120   ;;  %v29_v5 = vld [vmem:[%s542_s0 + $0x8] sm:$0xff]  ;;  %v382_v0 = vmov 0.0  }
   0x4   :  { %58 = vmatpush.msra.mxu0 %v32_v1  ;;  %v28_v4 = vld [vmem:[%s542_s0] sm:$0xff]  ;;  %v173_v6 = vld [vmem:[%s545_s3 + $0x78] sm:$0xff]  ;;  %v172_v7 = vld [vmem:[%s545_s3 + $0x70] sm:$0xff]  ;;  %26 = vst.msk [vmem:[#allocation2] sm:$0xff] %vm25_vm0, %v382_v0  ;;  %s308_s13 = sshll.u32 %s547_s5, 4  ;;  %s384_s14 = smov 128   ;;  %s309_s13 = int_to_ptr.hbm [resolvable:$true] %s308_s13 }
   0x5   :  { %174 = vmatpush.msra.mxu1 %v173_v6  ;;  %326 = vmatpush.msra.mxu2 %v173_v6  ;;  %v171_v8 = vld [vmem:[%s545_s3 + $0x68] sm:$0xff]  ;;  %v170_v9 = vld [vmem:[%s545_s3 + $0x60] sm:$0xff]  ;;  %v169_v11 = vld [vmem:[%s545_s3 + $0x58] sm:$0xff]  ;;  %27 = vst.msk [vmem:[#allocation2 + $0x8] sm:$0xff] %vm25_vm0, %v382_v0  ;;  %s385_s15 = smov 8  }
   0x6   :  { %59 = vmatpush.msra.mxu0 %v31_v2  ;;  %v346_v10 = vld [vmem:[%s544_s2] ss:$0 sm:$0xff]  ;;  %v168_v13 = vld [vmem:[%s545_s3 + $0x50] sm:$0xff]  ;;  %v167_v15 = vld [vmem:[%s545_s3 + $0x48] sm:$0xff] }
   0x7   :  { %175 = vmatpush.msra.mxu1 %v172_v7  ;;  %327 = vmatpush.msra.mxu2 %v172_v7  ;;  %v166_v17 = vld [vmem:[%s545_s3 + $0x40] sm:$0xff]  ;;  %v165_v19 = vld [vmem:[%s545_s3 + $0x38] sm:$0xff]  ;;  %v164_v20 = vld [vmem:[%s545_s3 + $0x30] sm:$0xff] }
   0x8   :  { %60 = vmatpush.msra.mxu0 %v30_v3  ;;  %v163_v23 = vld [vmem:[%s545_s3 + $0x28] sm:$0xff]  ;;  %v162_v27 = vld [vmem:[%s545_s3 + $0x20] sm:$0xff]  ;;  %v161_v30 = vld [vmem:[%s545_s3 + $0x18] sm:$0xff] }
   0x9   :  { %320 = vmatmul.msk.f32.vlgmr.msra.gmra.mxu0 %vm25_vm0, %v28_v4  ;;  %176 = vmatpush.msra.mxu1 %v171_v8  ;;  %v160_v34 = vld [vmem:[%s545_s3 + $0x10] sm:$0xff]  ;;  %v159_v37 = vld [vmem:[%s545_s3 + $0x8] sm:$0xff]  ;;  %v158_v42 = vld [vmem:[%s545_s3] sm:$0xff] }
   0xa   :  { %328 = vmatpush.msra.mxu2 %v171_v8 }
   0xb   :  { %177 = vmatpush.msra.mxu1 %v170_v9 }
   0xc   :  { %329 = vmatpush.msra.mxu2 %v170_v9 }
   0xd   :  { %178 = vmatpush.msra.mxu1 %v169_v11 }
   0xe   :  { %330 = vmatpush.msra.mxu2 %v169_v11 }
   0xf   :  { %179 = vmatpush.msra.mxu1 %v168_v13 }
  0x10   :  { %331 = vmatpush.msra.mxu2 %v168_v13 }
  0x11   :  { %321 = vmatmul.msk.f32.gmra.mxu0 %vm25_vm0, %v29_v5  ;;  %180 = vmatpush.msra.mxu1 %v167_v15 }
  0x12   :  { %332 = vmatpush.msra.mxu2 %v167_v15 }
  0x13   :  { %181 = vmatpush.msra.mxu1 %v166_v17 }
  0x14   :  { %333 = vmatpush.msra.mxu2 %v166_v17 }
  0x15   :  { %182 = vmatpush.msra.mxu1 %v165_v19 }
  0x16   :  { %334 = vmatpush.msra.mxu2 %v165_v19 }
  0x17   :  { %183 = vmatpush.msra.mxu1 %v164_v20 }
  0x18   :  { %335 = vmatpush.msra.mxu2 %v164_v20 }
  0x19   :  { %184 = vmatpush.msra.mxu1 %v163_v23 }
  0x1a   :  { %336 = vmatpush.msra.mxu2 %v163_v23 }
  0x1b   :  { %185 = vmatpush.msra.mxu1 %v162_v27 }
  0x1c   :  { %337 = vmatpush.msra.mxu2 %v162_v27 }
  0x1d   :  { %186 = vmatpush.msra.mxu1 %v161_v30 }
  0x1e   :  { %338 = vmatpush.msra.mxu2 %v161_v30 }
  0x1f   :  { %187 = vmatpush.msra.mxu1 %v160_v34 }
  0x20   :  { %339 = vmatpush.msra.mxu2 %v160_v34 }
  0x21   :  { %188 = vmatpush.msra.mxu1 %v159_v37 }
  0x22   :  { %340 = vmatpush.msra.mxu2 %v159_v37 }
  0x23   :  { %189 = vmatpush.msra.mxu1 %v158_v42 }
  0x24   :  { %341 = vmatpush.msra.mxu2 %v158_v42 }
  0x86   :  { %v62_v12 = vpop.f32.mrf.mxu0 }
  0x87   :  { %v457_v14 = vadd.f32 %v346_v10, %v62_v12 }
  0x89   :  { %v463_v16 = vmul.f32 0.70710677, %v457_v14  ;;  %v68_v34 = vmul.f32 0.5, %v457_v14 }
  0x8b   :  { %v72_v18 = vmul.f32 %v463_v16, %v463_v16 }
  0x8d   :  { %v476_v21 = vmin.f32 %v72_v18, 16.0 }
  0x8e   :  { %v65_v22 = vpop.f32.mrf.mxu0 }
  0x8f   :  { %v74_v24 = vmul.f32 2.1237322e-06, %v476_v21  ;;  %v482_v25 = vadd.f32 %v346_v10, %v65_v22  ;;  %v85_v26 = vmul.f32 3.8918573e-05, %v476_v21 }
  0x91   :  { %v75_v28 = vadd.f32 0.00028619796, %v74_v24  ;;  %v489_v29 = vmul.f32 0.70710677, %v482_v25  ;;  %v86_v31 = vadd.f32 0.001143296, %v85_v26 }
  0x92   :  { %v69_v42 = vmul.f32 0.5, %v482_v25 }
  0x93   :  { %v76_v32 = vmul.f32 %v75_v28, %v476_v21  ;;  %v112_v33 = vmul.f32 %v489_v29, %v489_v29  ;;  %v87_v35 = vmul.f32 %v86_v31, %v476_v21 }
  0x95   :  { %v113_v36 = vmin.f32 %v112_v33, 16.0  ;;  %v88_v38 = vadd.f32 0.014752088, %v87_v35  ;;  %v77_v39 = vadd.f32 0.0036580483, %v76_v32 }
  0x97   :  { %v114_v40 = vmul.f32 2.1237322e-06, %v113_v36  ;;  %v125_v41 = vmul.f32 3.8918573e-05, %v113_v36  ;;  %v89_v43 = vmul.f32 %v88_v38, %v476_v21  ;;  %v78_v47 = vmul.f32 %v77_v39, %v476_v21 }
  0x99   :  { %v115_v44 = vadd.f32 0.00028619796, %v114_v40  ;;  %v126_v45 = vadd.f32 0.001143296, %v125_v41  ;;  %v90_v46 = vadd.f32 0.112945676, %v89_v43 }
  0x9a   :  { %v79_v54 = vadd.f32 0.05243302, %v78_v47 }
  0x9b   :  { %v116_v48 = vmul.f32 %v115_v44, %v113_v36  ;;  %v127_v49 = vmul.f32 %v126_v45, %v113_v36  ;;  %v91_v50 = vmul.f32 %v90_v46, %v476_v21  ;;  %v156_v45 = vld [vmem:[#allocation2] sm:$0xff] }
  0x9c   :  { %v80_v60 = vmul.f32 %v79_v54, %v476_v21 }
  0x9d   :  { %v128_v51 = vadd.f32 0.014752088, %v127_v49  ;;  %v117_v52 = vadd.f32 0.0036580483, %v116_v48  ;;  %v92_v53 = vadd.f32 0.4994258, %v91_v50 }
  0x9e   :  { %v81_v1 = vadd.f32 0.18741608, %v80_v60  ;;  %v157_v48 = vld [vmem:[#allocation2 + $0x8] sm:$0xff] }
  0x9f   :  { %v129_v55 = vmul.f32 %v128_v51, %v113_v36  ;;  %v93_v56 = vmul.f32 %v92_v53, %v476_v21  ;;  %v118_v58 = vmul.f32 %v117_v52, %v113_v36 }
  0xa0   :  { %v82_v6 = vmul.f32 %v81_v1, %v476_v21 }
  0xa1   :  { %v130_v57 = vadd.f32 0.112945676, %v129_v55  ;;  %v94_v59 = vadd.f32 1.0, %v93_v56  ;;  %v119_v63 = vadd.f32 0.05243302, %v118_v58 }
  0xa2   :  { %v83_v11 = vadd.f32 1.1283791, %v82_v6 }
  0xa3   :  { %v131_v61 = vmul.f32 %v130_v57, %v113_v36  ;;  %348 = vrcp.f32 %v94_v59  ;;  %v120_v5 = vmul.f32 %v119_v63, %v113_v36  ;;  %v106_v10 = vand.u32 2147483648, %v94_v59 }
  0xa4   :  { %v104_v13 = vand.u32 2147483647, %v94_v59  ;;  %vm100_vm2 = vweird.f32 %v94_v59  ;;  %v84_v22 = vmul.f32 %v83_v11, %v463_v16 }
  0xa5   :  { %v132_v62 = vadd.f32 0.4994258, %v131_v61  ;;  %v121_v9 = vadd.f32 0.18741608, %v120_v5  ;;  %v107_v19 = vor.u32 1.1754944e-38, %v106_v10 }
  0xa6   :  { %vm105_vm4 = vcmp.eq.f32.partialorder %v104_v13, 8.507059e+37 }
  0xa7   :  { %v133_v2 = vmul.f32 %v132_v62, %v113_v36  ;;  %v122_v18 = vmul.f32 %v121_v9, %v113_v36 }
  0xa9   :  { %v134_v3 = vadd.f32 1.0, %v133_v2  ;;  %v349_v4 = vpop.eup %348  ;;  %v123_v28 = vadd.f32 1.1283791, %v122_v18 }
  0xaa   :  { %v96_v7 = vmul.f32 %v349_v4, %v94_v59  ;;  %vm101_vm1 = vweird.f32 %v349_v4 }
  0xab   :  { %350 = vrcp.f32 %v134_v3  ;;  %vm102_vm3 = vmor %vm100_vm2, %vm101_vm1  ;;  %v146_v27 = vand.u32 2147483648, %v134_v3  ;;  %v144_v31 = vand.u32 2147483647, %v134_v3  ;;  %vm140_vm6 = vweird.f32 %v134_v3 }
  0xac   :  { %v97_v8 = vsub.f32 1.0, %v96_v7  ;;  %v124_v16 = vmul.f32 %v123_v28, %v489_v29  ;;  %v347_v29 = vld [vmem:[%s546_s4] ss:$0 sm:$0xff]  ;;  %s383_s4 = smov [#allocation3]  }
  0xad   :  { %v147_v36 = vor.u32 1.1754944e-38, %v146_v27  ;;  %vm145_vm8 = vcmp.eq.f32.partialorder %v144_v31, 8.507059e+37  ;;  %s306_s10 = sshll.u32 %s383_s4, 4  ;;  %s307_s10 = int_to_ptr.vmem [resolvable:$true] %s306_s10 }
  0xae   :  { %v98_v12 = vmul.f32 %v349_v4, %v97_v8 }
  0xb0   :  { %v99_v17 = vadd.f32 %v349_v4, %v98_v12 }
  0xb1   :  { %v351_v15 = vpop.eup %350 }
  0xb2   :  { %v136_v20 = vmul.f32 %v351_v15, %v134_v3  ;;  %v103_v23 = vsel %vm102_vm3, %v349_v4, %v99_v17  ;;  %vm141_vm5 = vweird.f32 %v351_v15 }
  0xb3   :  { %v108_v21 = vsel %vm105_vm4, %v107_v19, %v103_v23  ;;  %vm142_vm7 = vmor %vm140_vm6, %vm141_vm5 }
  0xb4   :  { %v137_v24 = vsub.f32 1.0, %v136_v20  ;;  %v109_v26 = vmul.f32 %v108_v21, %v84_v22 }
  0xb6   :  { %v138_v30 = vmul.f32 %v351_v15, %v137_v24  ;;  %v322_v32 = vclamps-f32 %v109_v26, 1.0 }
  0xb8   :  { %v139_v33 = vadd.f32 %v351_v15, %v138_v30  ;;  %v152_v35 = vadd.f32 1.0, %v322_v32 }
  0xba   :  { %v143_v37 = vsel %vm142_vm7, %v351_v15, %v139_v33  ;;  %v154_v38 = vmul.f32 %v152_v35, %v68_v34 }
  0xbb   :  { %v148_v39 = vsel %vm145_vm8, %v147_v36, %v143_v37 }
  0xbc   :  { %v149_v40 = vmul.f32 %v148_v39, %v124_v16  ;;  %190 = vmatmul.f32.vlgmr.msra.gmra.mxu1 %v154_v38 }
  0xbe   :  { %v323_v41 = vclamps-f32 %v149_v40, 1.0 }
  0xc0   :  { %v153_v43 = vadd.f32 1.0, %v323_v41 }
  0xc2   :  { %v155_v44 = vmul.f32 %v153_v43, %v69_v42 }
  0xc4   :  { %193 = vmatmul.f32.vlgmr.msra.gmra.mxu2 %v155_v44 }
 0x139   :  { %v191_v46 = vpop.f32.mrf.mxu1 }
 0x13a   :  { %v197_v14 = vadd.f32 %v191_v46, %v156_v45 }
 0x13c   :  { %199 = vst.msk [vmem:[#allocation2] sm:$0xff] %vm25_vm0, %v197_v14 }
 0x143   :  { %v204_v47 = vld [vmem:[#allocation2] sm:$0xff] }
 0x144   :  { %v523_v49 = vadd.f32 %v347_v29, %v204_v47 }
 0x146   :  { %v214_v51 = vmul.f32 0.70710677, %v523_v49 }
 0x147   :  { %v194_v50 = vpop.f32.mrf.mxu2 }
 0x148   :  { %v198_v25 = vadd.f32 %v194_v50, %v157_v48  ;;  %v216_v52 = vmul.f32 %v214_v51, %v214_v51 }
 0x14a   :  { %200 = vst.msk [vmem:[#allocation2 + $0x8] sm:$0xff] %vm25_vm0, %v198_v25  ;;  %v217_v53 = vmin.f32 %v216_v52, 16.0  ;;  %v212_v25 = vmul.f32 0.5, %v523_v49 }
 0x14c   :  { %v218_v54 = vmul.f32 2.1237322e-06, %v217_v53  ;;  %v229_v55 = vmul.f32 3.8918573e-05, %v217_v53 }
 0x14e   :  { %v219_v56 = vadd.f32 0.00028619796, %v218_v54  ;;  %v230_v57 = vadd.f32 0.001143296, %v229_v55 }
 0x150   :  { %v220_v59 = vmul.f32 %v219_v56, %v217_v53  ;;  %v231_v60 = vmul.f32 %v230_v57, %v217_v53 }
 0x151   :  { %v205_v58 = vld [vmem:[#allocation2 + $0x8] sm:$0xff] }
 0x152   :  { %v527_v61 = vadd.f32 %v347_v29, %v205_v58  ;;  %v221_v62 = vadd.f32 0.0036580483, %v220_v59  ;;  %v232_v63 = vadd.f32 0.014752088, %v231_v60 }
 0x154   :  { %v530_v0 = vmul.f32 0.70710677, %v527_v61  ;;  %v233_v1 = vmul.f32 %v232_v63, %v217_v53  ;;  %v222_v3 = vmul.f32 %v221_v62, %v217_v53 }
 0x156   :  { %v256_v2 = vmul.f32 %v530_v0, %v530_v0  ;;  %v234_v4 = vadd.f32 0.112945676, %v233_v1  ;;  %v223_v9 = vadd.f32 0.05243302, %v222_v3 }
 0x158   :  { %v257_v5 = vmin.f32 %v256_v2, 16.0  ;;  %v235_v6 = vmul.f32 %v234_v4, %v217_v53  ;;  %v224_v18 = vmul.f32 %v223_v9, %v217_v53  ;;  %v213_v2 = vmul.f32 0.5, %v527_v61 }
 0x15a   :  { %v258_v7 = vmul.f32 2.1237322e-06, %v257_v5  ;;  %v269_v8 = vmul.f32 3.8918573e-05, %v257_v5  ;;  %v236_v10 = vadd.f32 0.4994258, %v235_v6 }
 0x15b   :  { %v225_v21 = vadd.f32 0.18741608, %v224_v18 }
 0x15c   :  { %v259_v11 = vadd.f32 0.00028619796, %v258_v7  ;;  %v270_v12 = vadd.f32 0.001143296, %v269_v8  ;;  %v237_v13 = vmul.f32 %v236_v10, %v217_v53 }
 0x15d   :  { %v226_v30 = vmul.f32 %v225_v21, %v217_v53 }
 0x15e   :  { %v260_v15 = vmul.f32 %v259_v11, %v257_v5  ;;  %v271_v17 = vmul.f32 %v270_v12, %v257_v5  ;;  %v238_v19 = vadd.f32 1.0, %v237_v13 }
 0x15f   :  { %v227_v36 = vadd.f32 1.1283791, %v226_v30 }
 0x160   :  { %v272_v20 = vadd.f32 0.014752088, %v271_v17  ;;  %352 = vrcp.f32 %v238_v19  ;;  %v261_v22 = vadd.f32 0.0036580483, %v260_v15  ;;  %v250_v16 = vand.u32 2147483648, %v238_v19 }
 0x161   :  { %v248_v38 = vand.u32 2147483647, %v238_v19  ;;  %vm244_vm10 = vweird.f32 %v238_v19  ;;  %v228_v43 = vmul.f32 %v227_v36, %v214_v51 }
 0x162   :  { %v273_v23 = vmul.f32 %v272_v20, %v257_v5  ;;  %v262_v26 = vmul.f32 %v261_v22, %v257_v5  ;;  %v251_v42 = vor.u32 1.1754944e-38, %v250_v16 }
 0x163   :  { %vm249_vm12 = vcmp.eq.f32.partialorder %v248_v38, 8.507059e+37 }
 0x164   :  { %v274_v24 = vadd.f32 0.112945676, %v273_v23  ;;  %v263_v33 = vadd.f32 0.05243302, %v262_v26 }
 0x166   :  { %v275_v27 = vmul.f32 %v274_v24, %v257_v5  ;;  %v353_v28 = vpop.eup %352  ;;  %v264_v40 = vmul.f32 %v263_v33, %v257_v5 }
 0x167   :  { %v240_v31 = vmul.f32 %v353_v28, %v238_v19  ;;  %vm245_vm9 = vweird.f32 %v353_v28 }
 0x168   :  { %v276_v32 = vadd.f32 0.4994258, %v275_v27  ;;  %vm246_vm11 = vmor %vm244_vm10, %vm245_vm9  ;;  %v265_v46 = vadd.f32 0.18741608, %v264_v40 }
 0x169   :  { %v241_v34 = vsub.f32 1.0, %v240_v31 }
 0x16a   :  { %v277_v35 = vmul.f32 %v276_v32, %v257_v5  ;;  %v266_v48 = vmul.f32 %v265_v46, %v257_v5 }
 0x16b   :  { %v242_v37 = vmul.f32 %v353_v28, %v241_v34 }
 0x16c   :  { %v278_v39 = vadd.f32 1.0, %v277_v35  ;;  %v267_v56 = vadd.f32 1.1283791, %v266_v48 }
 0x16d   :  { %v243_v41 = vadd.f32 %v353_v28, %v242_v37 }
 0x16e   :  { %354 = vrcp.f32 %v278_v39  ;;  %v290_v54 = vand.u32 2147483648, %v278_v39  ;;  %v288_v58 = vand.u32 2147483647, %v278_v39  ;;  %vm284_vm14 = vweird.f32 %v278_v39 }
 0x16f   :  { %v247_v44 = vsel %vm246_vm11, %v353_v28, %v243_v41  ;;  %v268_v60 = vmul.f32 %v267_v56, %v530_v0 }
 0x170   :  { %v252_v45 = vsel %vm249_vm12, %v251_v42, %v247_v44  ;;  %v291_v59 = vor.u32 1.1754944e-38, %v290_v54  ;;  %vm289_vm1 = vcmp.eq.f32.partialorder %v288_v58, 8.507059e+37 }
 0x171   :  { %v253_v14 = vmul.f32 %v252_v45, %v228_v43 }
 0x173   :  { %v324_v47 = vclamps-f32 %v253_v14, 1.0 }
 0x174   :  { %v355_v29 = vpop.eup %354 }
 0x175   :  { %v280_v50 = vmul.f32 %v355_v29, %v278_v39  ;;  %v296_v52 = vadd.f32 1.0, %v324_v47  ;;  %vm285_vm13 = vweird.f32 %v355_v29 }
 0x176   :  { %vm286_vm15 = vmor %vm284_vm14, %vm285_vm13 }
 0x177   :  { %v281_v53 = vsub.f32 1.0, %v280_v50  ;;  %v298_v55 = vmul.f32 %v296_v52, %v212_v25 }
 0x179   :  { %v282_v57 = vmul.f32 %v355_v29, %v281_v53  ;;  %300 = vst.msk [vmem:[#allocation3] sm:$0xff] %vm25_vm0, %v298_v55 }
 0x17b   :  { %v283_v51 = vadd.f32 %v355_v29, %v282_v57 }
 0x17d   :  { %v287_v62 = vsel %vm286_vm15, %v355_v29, %v283_v51 }
 0x17e   :  { %v292_v63 = vsel %vm289_vm1, %v291_v59, %v287_v62 }
 0x17f   :  { %v293_v49 = vmul.f32 %v292_v63, %v268_v60 }
 0x181   :  { %v325_v1 = vclamps-f32 %v293_v49, 1.0 }
 0x183   :  { %v297_v3 = vadd.f32 1.0, %v325_v1 }
 0x185   :  { %v299_v4 = vmul.f32 %v297_v3, %v213_v2 }
 0x187   :  { %301 = vst.msk [vmem:[#allocation3 + $0x8] sm:$0xff] %vm25_vm0, %v299_v4 }
 0x188   :  { %314 = dma.vmem_to_hbm [thread:$0]  %s307_s10, 256, %s309_s13, [#allocation4], %s384_s14, %s384_s14, %s385_s15  }
 0x189   :  { %380 = dma.done.wait [#allocation4], 256  }
 0x18a   :  { %381 = vsyncadd [#allocation4], 4294967040 }
 0x18b   :  { %319 = vsyncpa [#allocation4], 1 }

</bundles_post_ra>
